<compile_context>
chip_gen: v5e
topology: v5e:2x2
jax: 0.10.0
libtpu: 0.0.40
codegen_flags: <defaults>
</compile_context>

<pallas_src>
import numpy as np
import jax
import jax.numpy as jnp
from jax.experimental import pallas as pl
from jax.experimental.pallas import tpu as pltpu


TILE_M = 512   # row tile of A_hat / output
TILE_K = 512   # reduction (neighbor) tile of A_hat
LANE = 128     # lane-dense feature padding
RESIDENT_H_MAX_BYTES = 16 * 1024 * 1024   # keep H in VMEM only if it fits comfortably


def _round_up(x, m):
    return ((x + m - 1) // m) * m


def _pad2d(x, rows, cols):
    r, c = x.shape
    return jnp.pad(x, ((0, rows - r), (0, cols - c)))


# ---------------------------------------------------------------------------
# Kernel 1: feature transform  H = X @ W   (row-tiled, bf16 inputs, f32 acc)
# ---------------------------------------------------------------------------
def _xw_kernel(x_ref, w_ref, o_ref):
    o_ref[...] = jnp.dot(
        x_ref[...], w_ref[...], preferred_element_type=jnp.float32
    ).astype(o_ref.dtype)


def feature_transform(x_p, w_p, *, tm):
    n_pad, fin_p = x_p.shape
    fout_p = w_p.shape[1]
    return pl.pallas_call(
        _xw_kernel,
        out_shape=jax.ShapeDtypeStruct((n_pad, fout_p), jnp.bfloat16),
        grid=(n_pad // tm,),
        in_specs=[
            pl.BlockSpec((tm, fin_p), lambda i: (i, 0)),
            pl.BlockSpec((fin_p, fout_p), lambda i: (0, 0)),
        ],
        out_specs=pl.BlockSpec((tm, fout_p), lambda i: (i, 0)),
        compiler_params=pltpu.CompilerParams(
            dimension_semantics=("parallel",)
        ),
    )(x_p, w_p)


# ---------------------------------------------------------------------------
# Kernel 2: aggregation  out = relu(A_hat @ H + b)
#   grid = (row tiles, max nonzero k-tiles per row tile)
#   Scalar-prefetched compacted k-tile index lists drive the A index_map so
#   all-zero adjacency tiles are never DMA'd; H is VMEM-resident and sliced
#   in-kernel; f32 accumulator in VMEM scratch; bf16 or f32 output.
# ---------------------------------------------------------------------------
def gcn_aggregate(kcnt, kidx_flat, max_nnz, a_p, h_p, b_p, out_dtype,
                  *, tm=TILE_M, tk=TILE_K, resident_h=True):
    n_pad = a_p.shape[0]
    fout_p = h_p.shape[1]
    n_i = n_pad // tm

    # A tile (i, nonzero-k-list[i][k]); tail steps repeat the last valid index,
    # so the block index does not change and Pallas skips the re-DMA.
    def a_index_map(i, k, cnt_ref, idx_ref):
        return (i, idx_ref[i * max_nnz + k])

    if resident_h:
        # Whole H resident in VMEM across the grid (constant block index).
        h_spec = pl.BlockSpec((n_pad, fout_p), lambda i, k, c, idx: (0, 0))
    else:
        # TODO(synk): streaming fallback for very large graphs (H > VMEM budget).
        h_spec = pl.BlockSpec(
            (tk, fout_p), lambda i, k, c, idx: (idx[i * max_nnz + k], 0)
        )

    def kernel(cnt_ref, idx_ref, a_ref, h_ref, b_ref, o_ref, acc_ref):
        i = pl.program_id(0)
        k = pl.program_id(1)

        @pl.when(k == 0)
        def _():
            acc_ref[...] = jnp.zeros_like(acc_ref)

        # Only genuine nonzero adjacency tiles contribute (tail steps are repeats).
        @pl.when(k < cnt_ref[i])
        def _():
            if resident_h:
                kk = idx_ref[i * max_nnz + k]
                start = pl.multiple_of(kk * tk, tk)
                h_tile = h_ref[pl.ds(start, tk), :]
            else:
                h_tile = h_ref[...]
            acc_ref[...] += jnp.dot(
                a_ref[...], h_tile, preferred_element_type=jnp.float32
            )

        @pl.when(k == pl.num_programs(1) - 1)
        def _():
            o_ref[...] = jnp.maximum(acc_ref[...] + b_ref[...], 0.0).astype(
                o_ref.dtype
            )

    return pl.pallas_call(
        kernel,
        out_shape=jax.ShapeDtypeStruct((n_pad, fout_p), out_dtype),
        grid_spec=pltpu.PrefetchScalarGridSpec(
            num_scalar_prefetch=2,
            grid=(n_i, max_nnz),
            in_specs=[
                pl.BlockSpec((tm, tk), a_index_map),
                h_spec,
                pl.BlockSpec((1, fout_p), lambda i, k, c, idx: (0, 0)),
            ],
            out_specs=pl.BlockSpec((tm, fout_p), lambda i, k, c, idx: (i, 0)),
            scratch_shapes=[pltpu.VMEM((tm, fout_p), jnp.float32)],
        ),
        compiler_params=pltpu.CompilerParams(
            dimension_semantics=("parallel", "arbitrary")
        ),
    )(kcnt, kidx_flat, a_p, h_p, b_p)


# ---------------------------------------------------------------------------
# Host-side preprocessing: padded bf16 adjacency + compacted block-sparsity
# tables (built once per graph, outside the hot loop).
# ---------------------------------------------------------------------------
def build_adjacency_blocks(a_hat, n_pad, tm, tk):
    a_np = np.asarray(a_hat, dtype=np.float32)
    n = a_np.shape[0]
    a_pad = np.zeros((n_pad, n_pad), np.float32)
    a_pad[:n, :n] = a_np
    n_i, n_k = n_pad // tm, n_pad // tk

    nz = a_pad.reshape(n_i, tm, n_k, tk).any(axis=(1, 3))      # [n_i, n_k] bool
    cnt = nz.sum(axis=1).astype(np.int32)                       # nonzero k-tiles per row tile
    max_nnz = max(int(cnt.max()), 1)

    kidx = np.zeros((n_i, max_nnz), np.int32)
    for i in range(n_i):
        idx = np.nonzero(nz[i])[0].astype(np.int32)
        if idx.size == 0:
            idx = np.array([0], np.int32)
        kidx[i] = np.concatenate(
            [idx, np.full((max_nnz - idx.size,), idx[-1], np.int32)]
        )

    a_bf = jnp.asarray(a_pad, dtype=jnp.bfloat16)   # built directly in bf16
    return a_bf, jnp.asarray(cnt), jnp.asarray(kidx.reshape(-1)), max_nnz


def gcn_normalized_adjacency(edge_index, num_nodes):
    """Dense equivalent of GCNConv's add_self_loops + symmetric normalization."""
    src, dst = edge_index[0], edge_index[1]
    a = jnp.zeros((num_nodes, num_nodes), jnp.float32)
    a = a.at[dst, src].add(1.0)
    a = jnp.minimum(a, 1.0)                               # dedupe parallel edges
    a = a + jnp.eye(num_nodes, dtype=jnp.float32)         # self-loops
    deg = a.sum(axis=1)
    d_inv_sqrt = jnp.where(deg > 0, jax.lax.rsqrt(deg), 0.0)
    return a * d_inv_sqrt[:, None] * d_inv_sqrt[None, :]


def init_encoder_params(key, in_channels, out_channels, k=2):
    """Deterministic glorot-style init. Weights stored as (Fin, Fout)."""
    dims = [in_channels] + [2 * out_channels] * (k - 1) + [out_channels]
    params = []
    for i in range(k):
        key, kw = jax.random.split(key)
        fin, fout = dims[i], dims[i + 1]
        scale = jnp.sqrt(6.0 / (fin + fout))
        w = jax.random.uniform(kw, (fin, fout), jnp.float32, -scale, scale)
        b = jnp.zeros((fout,), jnp.float32)
        params.append((w, b))
    return params


def encoder_forward(params, x, a_hat, *, out_channels, tm=TILE_M, tk=TILE_K):
    """skip=False path: x = relu(conv_i(x, edge_index)) for i in range(k)."""
    n = x.shape[0]
    n_pad = _round_up(n, max(tm, tk))
    tm_xw = 1024 if n_pad % 1024 == 0 else tm      # bigger row tile for X@W

    a_bf, kcnt, kidx, max_nnz = build_adjacency_blocks(a_hat, n_pad, tm, tk)

    h = x
    n_layers = len(params)
    for li, (w, b) in enumerate(params):
        fin, fout = w.shape
        fin_p = _round_up(fin, LANE)
        fout_p = _round_up(fout, LANE)

        # bf16 layer outputs stay padded, so only layer 0 needs a pad/cast pass.
        if h.shape == (n_pad, fin_p) and h.dtype == jnp.bfloat16:
            x_p = h
        else:
            x_p = _pad2d(h, n_pad, fin_p).astype(jnp.bfloat16)
        w_p = _pad2d(w, fin_p, fout_p).astype(jnp.bfloat16)
        b_p = jnp.pad(b, (0, fout_p - fout)).reshape(1, fout_p).astype(jnp.float32)

        xw = feature_transform(x_p, w_p, tm=tm_xw)          # (n_pad, fout_p) bf16

        resident_h = (n_pad * fout_p * 2) <= RESIDENT_H_MAX_BYTES
        out_dtype = jnp.float32 if li == n_layers - 1 else jnp.bfloat16
        h = gcn_aggregate(kcnt, kidx, max_nnz, a_bf, xw, b_p, out_dtype,
                          tm=tm, tk=tk, resident_h=resident_h)

    return h[:n, :out_channels]


# ---------------------------------------------------------------------------
# Pure-JAX reference (mirrors the kernel's bf16 casts) for sanity check
# ---------------------------------------------------------------------------
def encoder_reference(params, x, a_hat):
    a = a_hat.astype(jnp.bfloat16).astype(jnp.float32)
    h = x
    n_layers = len(params)
    for li, (w, b) in enumerate(params):
        hb = h.astype(jnp.bfloat16).astype(jnp.float32)
        wb = w.astype(jnp.bfloat16).astype(jnp.float32)
        xw = (hb @ wb).astype(jnp.bfloat16).astype(jnp.float32)
        h = jnp.maximum(a @ xw + b[None, :], 0.0)
        if li < n_layers - 1:
            h = h.astype(jnp.bfloat16).astype(jnp.float32)   # bf16 inter-layer output
    return h


if __name__ == "__main__":
    key = jax.random.PRNGKey(0)

    num_nodes = 16
    in_channels = 8
    out_channels = 16
    k = 2

    # deterministic node features
    key, kx = jax.random.split(key)
    x = jax.random.normal(kx, (num_nodes, in_channels), jnp.float32)

    # deterministic small (symmetric) edge list: ring + a few chords
    src, dst = [], []
    for i in range(num_nodes):
        j = (i + 1) % num_nodes
        src += [i, j]
        dst += [j, i]
    for i in range(0, num_nodes, 4):
        j = (i + num_nodes // 2) % num_nodes
        src += [i, j]
        dst += [j, i]
    edge_index = jnp.array([src, dst], dtype=jnp.int32)

    a_hat = gcn_normalized_adjacency(edge_index, num_nodes)
    params = init_encoder_params(key, in_channels, out_channels, k=k)

    out = encoder_forward(params, x, a_hat, out_channels=out_channels)
    out = jax.block_until_ready(out)

    ref = encoder_reference(params, x, a_hat)
    assert out.shape == (num_nodes, out_channels), out.shape
    assert jnp.allclose(out, ref, atol=2e-2, rtol=2e-2), "mismatch vs reference"

    print("KERNEL_OK")
</pallas_src>

<mosaic_0001>
module attributes {stable_mosaic.version = 11 : i64} {
  func.func @_xw_kernel(%arg0: i32, %arg1: memref<512x128xbf16, #tpu.memory_space<vmem>>, %arg2: memref<128x128xbf16, #tpu.memory_space<vmem>>, %arg3: memref<512x128xbf16, #tpu.memory_space<vmem>>) attributes {dimension_semantics = [#tpu.dimension_semantics<parallel>], iteration_bounds = array<i64: 1>, scalar_prefetch = 0 : i64, scratch_operands = 0 : i64, tpu.core_type = #tpu.core_type<tc>, window_params = [{transform_indices = @transform_0, window_bounds = array<i64: 512, 128>}, {pipeline_mode = #tpu.pipeline_mode<synchronous>, transform_indices = @transform_1, window_bounds = array<i64: 128, 128>}, {transform_indices = @transform_2, window_bounds = array<i64: 512, 128>}]} {
    %c0 = arith.constant 0 : index
    %c0_0 = arith.constant 0 : index
    %0 = vector.load %arg1[%c0, %c0_0] : memref<512x128xbf16, #tpu.memory_space<vmem>>, vector<512x128xbf16>
    %c0_1 = arith.constant 0 : index
    %c0_2 = arith.constant 0 : index
    %1 = vector.load %arg2[%c0_1, %c0_2] : memref<128x128xbf16, #tpu.memory_space<vmem>>, vector<128x128xbf16>
    %cst = arith.constant dense<0.000000e+00> : vector<512x128xf32>
    %2 = tpu.matmul %0, %1, %cst {dimension_numbers = #tpu.dot_dimension_numbers<[1], [0], [0], [1], [0, 0, 1, 1], [], []>} : vector<512x128xbf16>, vector<128x128xbf16>, vector<512x128xf32> -> vector<512x128xf32>
    %3 = arith.truncf %2 : vector<512x128xf32> to vector<512x128xbf16>
    %c0_3 = arith.constant 0 : index
    %c0_4 = arith.constant 0 : index
    %4 = vector.load %arg3[%c0_3, %c0_4] : memref<512x128xbf16, #tpu.memory_space<vmem>>, vector<512x128xbf16>
    tpu.vector_store %arg3[%c0_3, %c0_4], %3 {strides = array<i32>} : memref<512x128xbf16, #tpu.memory_space<vmem>>, vector<512x128xbf16>,
    return
  }
  func.func @transform_0(%arg0: i32) -> (i32, i32) {
    %c0_i32 = arith.constant 0 : i32
    %c0_i32_0 = arith.constant 0 : i32
    return %arg0, %c0_i32 : i32, i32
  }
  func.func @transform_1(%arg0: i32) -> (i32, i32) {
    %c0_i32 = arith.constant 0 : i32
    %c0_i32_0 = arith.constant 0 : i32
    %c0_i32_1 = arith.constant 0 : i32
    return %c0_i32, %c0_i32_0 : i32, i32
  }
  func.func @transform_2(%arg0: i32) -> (i32, i32) {
    %c0_i32 = arith.constant 0 : i32
    %c0_i32_0 = arith.constant 0 : i32
    return %arg0, %c0_i32 : i32, i32
  }
}

</mosaic_0001>

<bundles_post_ra>
// kernel: tpu_custom_call.1
= control target key start
LH: loop header
LB: loop body
LE: loop exit
PB: predicated region body
PF: predicated region fallthrough
CT: control target
= control target key end

     0   :  { %7 = vsyncpa [#allocation3], 0  ;;  %s1217_s0 = inlined_call_operand.hbm [shape: bf16[512,128], index: 0, kind: input, shape index: {}]   ;;  %s1218_s1 = inlined_call_operand.hbm [shape: bf16[128,128], index: 1, kind: input, shape index: {}]   ;;  %s1219_s2 = inlined_call_operand.hbm [shape: bf16[512,128], index: 2, kind: output, shape index: {}]  }
   0x1   :  { %8 = vsyncpa [#allocation6], 0 }
   0x2   :  { %9 = vsyncpa [#allocation4], 0  ;;  %s14_s11 = sshll.u32 %s1217_s0, 4  ;;  %s1179_s12 = smov [#allocation2]   ;;  %s15_s11 = int_to_ptr.hbm [resolvable:$true] %s14_s11 }
   0x3   :  { %s16_s13 = sshll.u32 %s1179_s12, 4  ;;  %s27_s16 = sshll.u32 %s1218_s1, 4  ;;  %s17_s13 = int_to_ptr.vmem [resolvable:$true] %s16_s13  ;;  %s28_s16 = int_to_ptr.hbm [resolvable:$true] %s27_s16 }
   0x4   :  { %s1180_s17 = smov 64   ;;  %s1181_s18 = smov 4  }
   0x5   :  { %22 = dma.hbm_to_vmem [thread:$0]  %s15_s11, 4096, %s17_s13, [#allocation3], %s1180_s17, %s1180_s17, %s1181_s18  }
   0x6   :  { %s1182_s19 = smov [#allocation5]  }
   0x7   :  { %s29_s20 = sshll.u32 %s1182_s19, 4  ;;  %s30_s20 = int_to_ptr.vmem [resolvable:$true] %s29_s20 }
   0x8   :  { %35 = dma.hbm_to_vmem [thread:$0]  %s28_s16, 1024, %s30_s20, [#allocation6], %s1180_s17, %s1180_s17, %s1181_s18  }
   0x9   :  { %1173 = dma.done.wait [#allocation3], 4096  }
   0xa   :  { %1174 = vsyncadd [#allocation3], 4294963200 }
   0xb   :  { %1175 = dma.done.wait [#allocation6], 1024  }
   0xc   :  { %1176 = vsyncadd [#allocation6], 4294966272  ;;  %v880_v0 = vld [vmem:[#allocation5 + $0x38] sm:$0xff]  ;;  %v879_v1 = vld [vmem:[#allocation5 + $0x30] sm:$0xff]  ;;  %s1183_s0 = smov [#allocation7]   ;;  %s667_s23 = sshll.u32 %s1219_s2, 4  ;;  %s668_s23 = int_to_ptr.hbm [resolvable:$true] %s667_s23 }
   0xd   :  { %364 = vmatpush.bf16.msra.mxu0 %v880_v0  ;;  %1072 = vmatpush.bf16.msra.mxu1 %v880_v0  ;;  %v878_v2 = vld [vmem:[#allocation5 + $0x28] sm:$0xff]  ;;  %v877_v3 = vld [vmem:[#allocation5 + $0x20] sm:$0xff]  ;;  %v876_v4 = vld [vmem:[#allocation5 + $0x18] sm:$0xff]  ;;  %s665_s1 = sshll.u32 %s1183_s0, 4  ;;  %s666_s1 = int_to_ptr.vmem [resolvable:$true] %s665_s1 }
   0xe   :  { %1073 = vmatpush.bf16.msra.mxu2 %v880_v0  ;;  %1074 = vmatpush.bf16.msra.mxu3 %v880_v0  ;;  %v875_v5 = vld [vmem:[#allocation5 + $0x10] sm:$0xff]  ;;  %v874_v6 = vld [vmem:[#allocation5 + $0x8] sm:$0xff]  ;;  %v873_v7 = vld [vmem:[#allocation5] sm:$0xff] }
   0xf   :  { %v841_v8 = vld [vmem:[#allocation2] sm:$0xff]  ;;  %v842_v12 = vld [vmem:[#allocation2 + $0x8] sm:$0xff]  ;;  %v843_v16 = vld [vmem:[#allocation2 + $0x10] sm:$0xff] }
  0x10   :  { %v849_v9 = vld [vmem:[#allocation2 + $0x40] sm:$0xff]  ;;  %v850_v13 = vld [vmem:[#allocation2 + $0x48] sm:$0xff]  ;;  %v851_v17 = vld [vmem:[#allocation2 + $0x50] sm:$0xff] }
  0x11   :  { %365 = vmatpush.bf16.msra.mxu0 %v879_v1  ;;  %1075 = vmatpush.bf16.msra.mxu1 %v879_v1  ;;  %v857_v10 = vld [vmem:[#allocation2 + $0x80] sm:$0xff]  ;;  %v858_v14 = vld [vmem:[#allocation2 + $0x88] sm:$0xff]  ;;  %v859_v18 = vld [vmem:[#allocation2 + $0x90] sm:$0xff] }
  0x12   :  { %1076 = vmatpush.bf16.msra.mxu2 %v879_v1  ;;  %1077 = vmatpush.bf16.msra.mxu3 %v879_v1  ;;  %v865_v11 = vld [vmem:[#allocation2 + $0xc0] sm:$0xff]  ;;  %v866_v15 = vld [vmem:[#allocation2 + $0xc8] sm:$0xff]  ;;  %v867_v19 = vld [vmem:[#allocation2 + $0xd0] sm:$0xff] }
  0x13   :  { %v844_v20 = vld [vmem:[#allocation2 + $0x18] sm:$0xff]  ;;  %v845_v24 = vld [vmem:[#allocation2 + $0x20] sm:$0xff]  ;;  %v846_v28 = vld [vmem:[#allocation2 + $0x28] sm:$0xff] }
  0x14   :  { %v852_v21 = vld [vmem:[#allocation2 + $0x58] sm:$0xff]  ;;  %v853_v25 = vld [vmem:[#allocation2 + $0x60] sm:$0xff]  ;;  %v854_v29 = vld [vmem:[#allocation2 + $0x68] sm:$0xff] }
  0x15   :  { %366 = vmatpush.bf16.msra.mxu0 %v878_v2  ;;  %1078 = vmatpush.bf16.msra.mxu1 %v878_v2  ;;  %v860_v22 = vld [vmem:[#allocation2 + $0x98] sm:$0xff]  ;;  %v861_v26 = vld [vmem:[#allocation2 + $0xa0] sm:$0xff]  ;;  %v862_v30 = vld [vmem:[#allocation2 + $0xa8] sm:$0xff] }
  0x16   :  { %1079 = vmatpush.bf16.msra.mxu2 %v878_v2  ;;  %1080 = vmatpush.bf16.msra.mxu3 %v878_v2  ;;  %v868_v23 = vld [vmem:[#allocation2 + $0xd8] sm:$0xff]  ;;  %v869_v27 = vld [vmem:[#allocation2 + $0xe0] sm:$0xff]  ;;  %v870_v31 = vld [vmem:[#allocation2 + $0xe8] sm:$0xff] }
  0x17   :  { %v847_v32 = vld [vmem:[#allocation2 + $0x30] sm:$0xff]  ;;  %v848_v36 = vld [vmem:[#allocation2 + $0x38] sm:$0xff] }
  0x18   :  { %v855_v33 = vld [vmem:[#allocation2 + $0x70] sm:$0xff]  ;;  %v856_v37 = vld [vmem:[#allocation2 + $0x78] sm:$0xff] }
  0x19   :  { %367 = vmatpush.bf16.msra.mxu0 %v877_v3  ;;  %1081 = vmatpush.bf16.msra.mxu1 %v877_v3  ;;  %v863_v34 = vld [vmem:[#allocation2 + $0xb0] sm:$0xff]  ;;  %v864_v38 = vld [vmem:[#allocation2 + $0xb8] sm:$0xff] }
  0x1a   :  { %1082 = vmatpush.bf16.msra.mxu2 %v877_v3  ;;  %1083 = vmatpush.bf16.msra.mxu3 %v877_v3  ;;  %v871_v35 = vld [vmem:[#allocation2 + $0xf0] sm:$0xff]  ;;  %v872_v39 = vld [vmem:[#allocation2 + $0xf8] sm:$0xff] }
  0x1d   :  { %368 = vmatpush.bf16.msra.mxu0 %v876_v4  ;;  %1084 = vmatpush.bf16.msra.mxu1 %v876_v4 }
  0x1e   :  { %1085 = vmatpush.bf16.msra.mxu2 %v876_v4  ;;  %1086 = vmatpush.bf16.msra.mxu3 %v876_v4 }
  0x21   :  { %369 = vmatpush.bf16.msra.mxu0 %v875_v5  ;;  %1087 = vmatpush.bf16.msra.mxu1 %v875_v5 }
  0x22   :  { %1088 = vmatpush.bf16.msra.mxu2 %v875_v5  ;;  %1089 = vmatpush.bf16.msra.mxu3 %v875_v5 }
  0x25   :  { %370 = vmatpush.bf16.msra.mxu0 %v874_v6  ;;  %1090 = vmatpush.bf16.msra.mxu1 %v874_v6 }
  0x26   :  { %1091 = vmatpush.bf16.msra.mxu2 %v874_v6  ;;  %1092 = vmatpush.bf16.msra.mxu3 %v874_v6 }
  0x29   :  { %371 = vmatpush.bf16.msra.mxu0 %v873_v7  ;;  %1093 = vmatpush.bf16.msra.mxu1 %v873_v7 }
  0x2a   :  { %1094 = vmatpush.bf16.msra.mxu2 %v873_v7  ;;  %1095 = vmatpush.bf16.msra.mxu3 %v873_v7 }
  0x2c   :  { %372 = vmatmul.bf16.vlgmr.msra.gmra.mxu0 %v841_v8  ;;  %412 = vmatmul.bf16.vlgmr.msra.gmra.mxu1 %v849_v9 }
  0x2d   :  { %452 = vmatmul.bf16.vlgmr.msra.gmra.mxu2 %v857_v10  ;;  %492 = vmatmul.bf16.vlgmr.msra.gmra.mxu3 %v865_v11 }
  0x3c   :  { %377 = vmatmul.bf16.gmra.mxu0 %v842_v12  ;;  %417 = vmatmul.bf16.gmra.mxu1 %v850_v13 }
  0x3d   :  { %457 = vmatmul.bf16.gmra.mxu2 %v858_v14  ;;  %497 = vmatmul.bf16.gmra.mxu3 %v866_v15 }
  0x4c   :  { %382 = vmatmul.bf16.gmra.mxu0 %v843_v16  ;;  %422 = vmatmul.bf16.gmra.mxu1 %v851_v17 }
  0x4d   :  { %462 = vmatmul.bf16.gmra.mxu2 %v859_v18  ;;  %502 = vmatmul.bf16.gmra.mxu3 %v867_v19 }
  0x5c   :  { %387 = vmatmul.bf16.gmra.mxu0 %v844_v20  ;;  %427 = vmatmul.bf16.gmra.mxu1 %v852_v21 }
  0x5d   :  { %467 = vmatmul.bf16.gmra.mxu2 %v860_v22  ;;  %507 = vmatmul.bf16.gmra.mxu3 %v868_v23 }
  0x6c   :  { %392 = vmatmul.bf16.gmra.mxu0 %v845_v24  ;;  %432 = vmatmul.bf16.gmra.mxu1 %v853_v25 }
  0x6d   :  { %472 = vmatmul.bf16.gmra.mxu2 %v861_v26  ;;  %512 = vmatmul.bf16.gmra.mxu3 %v869_v27 }
  0x7c   :  { %397 = vmatmul.bf16.gmra.mxu0 %v846_v28  ;;  %437 = vmatmul.bf16.gmra.mxu1 %v854_v29 }
  0x7d   :  { %477 = vmatmul.bf16.gmra.mxu2 %v862_v30  ;;  %517 = vmatmul.bf16.gmra.mxu3 %v870_v31 }
  0x8c   :  { %402 = vmatmul.bf16.gmra.mxu0 %v847_v32  ;;  %442 = vmatmul.bf16.gmra.mxu1 %v855_v33 }
  0x8d   :  { %482 = vmatmul.bf16.gmra.mxu2 %v863_v34  ;;  %522 = vmatmul.bf16.gmra.mxu3 %v871_v35 }
  0x9c   :  { %407 = vmatmul.bf16.gmra.mxu0 %v848_v36  ;;  %447 = vmatmul.bf16.gmra.mxu1 %v856_v37 }
  0x9d   :  { %487 = vmatmul.bf16.gmra.mxu2 %v864_v38  ;;  %527 = vmatmul.bf16.gmra.mxu3 %v872_v39 }
  0xa9   :  { %v373_v40 = vpop.f32.mrf.mxu0  ;;  %v413_v41 = vpop.f32.mrf.mxu1 }
  0xb0   :  { %v453_v42 = vpop.f32.mrf.mxu2  ;;  %v493_v43 = vpop.f32.mrf.mxu3 }
  0xb1   :  { %v375_v44 = vpop.f32.mrf.mxu0  ;;  %v415_v45 = vpop.f32.mrf.mxu1 }
  0xb2   :  { %v884_v46 = vpack.c.bf16 %v375_v44, %v373_v40  ;;  %v924_v47 = vpack.c.bf16 %v415_v45, %v413_v41 }
  0xb4   :  { %885 = vst [vmem:[#allocation7] sm:$0xff] %v884_v46  }
  0xb5   :  { %1048 = vst [vmem:[#allocation7 + $0x40] sm:$0xff] %v924_v47  }
  0xb8   :  { %v455_v48 = vpop.f32.mrf.mxu2  ;;  %v495_v49 = vpop.f32.mrf.mxu3 }
  0xb9   :  { %v964_v50 = vpack.c.bf16 %v455_v48, %v453_v42  ;;  %v1004_v51 = vpack.c.bf16 %v495_v49, %v493_v43  ;;  %v378_v52 = vpop.f32.mrf.mxu0  ;;  %v418_v53 = vpop.f32.mrf.mxu1 }
  0xbb   :  { %1056 = vst [vmem:[#allocation7 + $0x80] sm:$0xff] %v964_v50  }
  0xbc   :  { %1064 = vst [vmem:[#allocation7 + $0xc0] sm:$0xff] %v1004_v51  }
  0xc0   :  { %v458_v54 = vpop.f32.mrf.mxu2  ;;  %v498_v55 = vpop.f32.mrf.mxu3 }
  0xc1   :  { %v380_v56 = vpop.f32.mrf.mxu0  ;;  %v420_v57 = vpop.f32.mrf.mxu1 }
  0xc2   :  { %v889_v58 = vpack.c.bf16 %v380_v56, %v378_v52  ;;  %v929_v59 = vpack.c.bf16 %v420_v57, %v418_v53 }
  0xc4   :  { %1041 = vst [vmem:[#allocation7 + $0x8] sm:$0xff] %v889_v58  }
  0xc5   :  { %1049 = vst [vmem:[#allocation7 + $0x48] sm:$0xff] %v929_v59  }
  0xc8   :  { %v460_v60 = vpop.f32.mrf.mxu2  ;;  %v500_v61 = vpop.f32.mrf.mxu3 }
  0xc9   :  { %v969_v62 = vpack.c.bf16 %v460_v60, %v458_v54  ;;  %v1009_v63 = vpack.c.bf16 %v500_v61, %v498_v55  ;;  %v383_v0 = vpop.f32.mrf.mxu0  ;;  %v423_v1 = vpop.f32.mrf.mxu1 }
  0xcb   :  { %1057 = vst [vmem:[#allocation7 + $0x88] sm:$0xff] %v969_v62  }
  0xcc   :  { %1065 = vst [vmem:[#allocation7 + $0xc8] sm:$0xff] %v1009_v63  }
  0xd0   :  { %v463_v2 = vpop.f32.mrf.mxu2  ;;  %v503_v3 = vpop.f32.mrf.mxu3 }
  0xd1   :  { %v385_v4 = vpop.f32.mrf.mxu0  ;;  %v425_v5 = vpop.f32.mrf.mxu1 }
  0xd2   :  { %v894_v6 = vpack.c.bf16 %v385_v4, %v383_v0  ;;  %v934_v7 = vpack.c.bf16 %v425_v5, %v423_v1 }
  0xd4   :  { %1042 = vst [vmem:[#allocation7 + $0x10] sm:$0xff] %v894_v6  }
  0xd5   :  { %1050 = vst [vmem:[#allocation7 + $0x50] sm:$0xff] %v934_v7  }
  0xd8   :  { %v465_v8 = vpop.f32.mrf.mxu2  ;;  %v505_v9 = vpop.f32.mrf.mxu3 }
  0xd9   :  { %v974_v10 = vpack.c.bf16 %v465_v8, %v463_v2  ;;  %v1014_v11 = vpack.c.bf16 %v505_v9, %v503_v3  ;;  %v388_v12 = vpop.f32.mrf.mxu0  ;;  %v428_v13 = vpop.f32.mrf.mxu1 }
  0xdb   :  { %1058 = vst [vmem:[#allocation7 + $0x90] sm:$0xff] %v974_v10  }
  0xdc   :  { %1066 = vst [vmem:[#allocation7 + $0xd0] sm:$0xff] %v1014_v11  }
  0xe0   :  { %v468_v14 = vpop.f32.mrf.mxu2  ;;  %v508_v15 = vpop.f32.mrf.mxu3 }
  0xe1   :  { %v390_v16 = vpop.f32.mrf.mxu0  ;;  %v430_v17 = vpop.f32.mrf.mxu1 }
  0xe2   :  { %v899_v18 = vpack.c.bf16 %v390_v16, %v388_v12  ;;  %v939_v19 = vpack.c.bf16 %v430_v17, %v428_v13 }
  0xe4   :  { %1043 = vst [vmem:[#allocation7 + $0x18] sm:$0xff] %v899_v18  }
  0xe5   :  { %1051 = vst [vmem:[#allocation7 + $0x58] sm:$0xff] %v939_v19  }
  0xe8   :  { %v470_v20 = vpop.f32.mrf.mxu2  ;;  %v510_v21 = vpop.f32.mrf.mxu3 }
  0xe9   :  { %v979_v22 = vpack.c.bf16 %v470_v20, %v468_v14  ;;  %v1019_v23 = vpack.c.bf16 %v510_v21, %v508_v15  ;;  %v393_v24 = vpop.f32.mrf.mxu0  ;;  %v433_v25 = vpop.f32.mrf.mxu1 }
  0xeb   :  { %1059 = vst [vmem:[#allocation7 + $0x98] sm:$0xff] %v979_v22  }
  0xec   :  { %1067 = vst [vmem:[#allocation7 + $0xd8] sm:$0xff] %v1019_v23  }
  0xf0   :  { %v473_v26 = vpop.f32.mrf.mxu2  ;;  %v513_v27 = vpop.f32.mrf.mxu3 }
  0xf1   :  { %v395_v28 = vpop.f32.mrf.mxu0  ;;  %v435_v29 = vpop.f32.mrf.mxu1 }
  0xf2   :  { %v904_v30 = vpack.c.bf16 %v395_v28, %v393_v24  ;;  %v944_v31 = vpack.c.bf16 %v435_v29, %v433_v25 }
  0xf4   :  { %1044 = vst [vmem:[#allocation7 + $0x20] sm:$0xff] %v904_v30  }
  0xf5   :  { %1052 = vst [vmem:[#allocation7 + $0x60] sm:$0xff] %v944_v31  }
  0xf8   :  { %v475_v32 = vpop.f32.mrf.mxu2  ;;  %v515_v33 = vpop.f32.mrf.mxu3 }
  0xf9   :  { %v984_v34 = vpack.c.bf16 %v475_v32, %v473_v26  ;;  %v1024_v35 = vpack.c.bf16 %v515_v33, %v513_v27  ;;  %v398_v36 = vpop.f32.mrf.mxu0  ;;  %v438_v37 = vpop.f32.mrf.mxu1 }
  0xfb   :  { %1060 = vst [vmem:[#allocation7 + $0xa0] sm:$0xff] %v984_v34  }
  0xfc   :  { %1068 = vst [vmem:[#allocation7 + $0xe0] sm:$0xff] %v1024_v35  }
 0x100   :  { %v478_v38 = vpop.f32.mrf.mxu2  ;;  %v518_v39 = vpop.f32.mrf.mxu3 }
 0x101   :  { %v400_v40 = vpop.f32.mrf.mxu0  ;;  %v440_v41 = vpop.f32.mrf.mxu1 }
 0x102   :  { %v909_v42 = vpack.c.bf16 %v400_v40, %v398_v36  ;;  %v949_v43 = vpack.c.bf16 %v440_v41, %v438_v37 }
 0x104   :  { %1045 = vst [vmem:[#allocation7 + $0x28] sm:$0xff] %v909_v42  }
 0x105   :  { %1053 = vst [vmem:[#allocation7 + $0x68] sm:$0xff] %v949_v43  }
 0x108   :  { %v480_v44 = vpop.f32.mrf.mxu2  ;;  %v520_v45 = vpop.f32.mrf.mxu3 }
 0x109   :  { %v989_v46 = vpack.c.bf16 %v480_v44, %v478_v38  ;;  %v1029_v47 = vpack.c.bf16 %v520_v45, %v518_v39  ;;  %v403_v48 = vpop.f32.mrf.mxu0  ;;  %v443_v49 = vpop.f32.mrf.mxu1 }
 0x10b   :  { %1061 = vst [vmem:[#allocation7 + $0xa8] sm:$0xff] %v989_v46  }
 0x10c   :  { %1069 = vst [vmem:[#allocation7 + $0xe8] sm:$0xff] %v1029_v47  }
 0x110   :  { %v483_v50 = vpop.f32.mrf.mxu2  ;;  %v523_v51 = vpop.f32.mrf.mxu3 }
 0x111   :  { %v405_v52 = vpop.f32.mrf.mxu0  ;;  %v445_v53 = vpop.f32.mrf.mxu1 }
 0x112   :  { %v914_v54 = vpack.c.bf16 %v405_v52, %v403_v48  ;;  %v954_v55 = vpack.c.bf16 %v445_v53, %v443_v49 }
 0x114   :  { %1046 = vst [vmem:[#allocation7 + $0x30] sm:$0xff] %v914_v54  }
 0x115   :  { %1054 = vst [vmem:[#allocation7 + $0x70] sm:$0xff] %v954_v55  }
 0x118   :  { %v485_v56 = vpop.f32.mrf.mxu2  ;;  %v525_v57 = vpop.f32.mrf.mxu3 }
 0x119   :  { %v994_v58 = vpack.c.bf16 %v485_v56, %v483_v50  ;;  %v1034_v59 = vpack.c.bf16 %v525_v57, %v523_v51  ;;  %v408_v60 = vpop.f32.mrf.mxu0  ;;  %v448_v61 = vpop.f32.mrf.mxu1 }
 0x11b   :  { %1062 = vst [vmem:[#allocation7 + $0xb0] sm:$0xff] %v994_v58  }
 0x11c   :  { %1070 = vst [vmem:[#allocation7 + $0xf0] sm:$0xff] %v1034_v59  }
 0x120   :  { %v488_v62 = vpop.f32.mrf.mxu2  ;;  %v528_v63 = vpop.f32.mrf.mxu3 }
 0x121   :  { %v410_v0 = vpop.f32.mrf.mxu0  ;;  %v450_v1 = vpop.f32.mrf.mxu1 }
 0x122   :  { %v919_v2 = vpack.c.bf16 %v410_v0, %v408_v60  ;;  %v959_v3 = vpack.c.bf16 %v450_v1, %v448_v61 }
 0x124   :  { %1047 = vst [vmem:[#allocation7 + $0x38] sm:$0xff] %v919_v2  }
 0x125   :  { %1055 = vst [vmem:[#allocation7 + $0x78] sm:$0xff] %v959_v3  }
 0x128   :  { %v490_v4 = vpop.f32.mrf.mxu2  ;;  %v530_v5 = vpop.f32.mrf.mxu3 }
 0x129   :  { %v999_v6 = vpack.c.bf16 %v490_v4, %v488_v62  ;;  %v1039_v7 = vpack.c.bf16 %v530_v5, %v528_v63 }
 0x12b   :  { %1063 = vst [vmem:[#allocation7 + $0xb8] sm:$0xff] %v999_v6  }
 0x12c   :  { %1071 = vst [vmem:[#allocation7 + $0xf8] sm:$0xff] %v1039_v7  }
 0x12d   :  { %673 = dma.vmem_to_hbm [thread:$0]  %s666_s1, 4096, %s668_s23, [#allocation4], %s1180_s17, %s1180_s17, %s1181_s18  }
 0x12e   :  { %1177 = dma.done.wait [#allocation4], 4096  }
 0x12f   :  { %1178 = vsyncadd [#allocation4], 4294963200 }
 0x130   :  { %678 = vsyncpa [#allocation3], 1 }
 0x131   :  { %679 = vsyncpa [#allocation6], 1 }
 0x132   :  { %680 = vsyncpa [#allocation4], 1 }

</bundles_post_ra>
